<compile_context>
chip_gen: v7x
topology: tpu7x:2x2x1
jax: 0.10.0
libtpu: 0.0.40
codegen_flags: <defaults>
</compile_context>

<pallas_src>
import functools

import jax
import jax.numpy as jnp
from jax import lax
from jax.experimental import pallas as pl
from jax.experimental.pallas import tpu as pltpu


def mlp_kernel(x_ref, w1_ref, b1_ref, w2_ref, b2_ref, w3_ref, b3_ref, o_ref):
    """One (TB, 16) batch tile; intermediates kept lane-dense as (features, TB)."""
    x = x_ref[...]                                                   # (TB, 16)

    # Layer 1: Linear(16 -> 8) + ReLU.  Contract the shared minor feature dim
    # of W1 (8,16) and x (TB,16) -> (8, TB): batch lands on the 128-lane axis
    # without ever materializing a transposed x in HBM.
    h1 = lax.dot_general(w1_ref[...], x, (((1,), (1,)), ((), ())),
                         preferred_element_type=jnp.float32)         # (8, TB)
    h1 = jnp.maximum(h1 + b1_ref[...], 0.0)

    # Layer 2: Linear(8 -> 64) + ReLU
    h2 = jnp.dot(w2_ref[...], h1, preferred_element_type=jnp.float32)  # (64, TB)
    h2 = jnp.maximum(h2 + b2_ref[...], 0.0)

    # Output: Linear(64 -> 1) + Sigmoid
    z = jnp.dot(w3_ref[...], h2, preferred_element_type=jnp.float32)
    z = z + b3_ref[...]                                              # (1, TB)
    # Numerically-stable exact sigmoid (exp on EUP; exact division for parity
    # with the PyTorch reference; no overflow for large |z|).
    e = jnp.exp(-jnp.abs(z))
    o_ref[...] = jnp.where(z >= 0, 1.0 / (1.0 + e), e / (1.0 + e)).astype(o_ref.dtype)


def _round_up(n, m):
    return ((n + m - 1) // m) * m


@functools.partial(jax.jit, static_argnames=("block_b",))
def nn_model_ica_forward(x, params, *, block_b=8192):
    """x: (B, 16) float32; params in PyTorch layout (see init_params).

    Returns (B, 1) float32 sigmoid outputs, identical semantics to the
    PyTorch module's forward.
    """
    B, F = x.shape
    assert F == 16, F

    # Batch tile on the lane axis:
    #  * always a multiple of 128 (lane-dense intermediates, unmasked stores),
    #  * capped at 8192 (VMEM-safe on v7x given the 16->128 lane padding of the
    #    streamed (TB,16) input block),
    #  * shrunk so the grid has >=4 steps when possible (megacore on v7x,
    #    DMA/compute overlap everywhere).
    tb_cap = min(_round_up(max(int(block_b), 1), 128), 8192)
    tb = max(128, min(tb_cap, _round_up(-(-B // 4), 128)))
    grid = (pl.cdiv(B, tb),)

    w1, b1, w2, b2, w3, b3 = (
        params["w1"], params["b1"], params["w2"],
        params["b2"], params["w3"], params["b3"],
    )

    # Tiny weights/biases: full-extent blocks, constant index map -> DMA'd once
    # and VMEM-resident across the whole batch grid.
    resident = lambda a: pl.BlockSpec(a.shape, lambda i: (0, 0))

    out = pl.pallas_call(
        mlp_kernel,
        out_shape=jax.ShapeDtypeStruct((1, B), jnp.float32),
        grid=grid,
        in_specs=[
            pl.BlockSpec((tb, 16), lambda i: (i, 0)),   # streamed batch tile
            resident(w1), resident(b1),
            resident(w2), resident(b2),
            resident(w3), resident(b3),
        ],
        out_specs=pl.BlockSpec((1, tb), lambda i: (0, i)),   # lane-dense output
        compiler_params=pltpu.CompilerParams(
            dimension_semantics=("parallel",),          # megacore-shard on v7x
        ),
    )(x, w1, b1, w2, b2, w3, b3)

    # (1, B) -> PyTorch's (B, 1): contiguous, so this is a free reshape.
    return out.reshape(B, 1)


def init_params(key):
    """PyTorch nn.Linear layout: weight (out, in), bias stored as (out, 1)."""
    ks = jax.random.split(key, 6)

    def uniform(k, shape, fan_in):
        bound = 1.0 / jnp.sqrt(fan_in)
        return jax.random.uniform(k, shape, jnp.float32, -bound, bound)

    return {
        "w1": uniform(ks[0], (8, 16), 16.0),
        "b1": uniform(ks[1], (8, 1), 16.0),
        "w2": uniform(ks[2], (64, 8), 8.0),
        "b2": uniform(ks[3], (64, 1), 8.0),
        "w3": uniform(ks[4], (1, 64), 64.0),
        "b3": uniform(ks[5], (1, 1), 64.0),
    }


def reference_forward(x, p):
    h1 = jnp.maximum(x @ p["w1"].T + p["b1"].T, 0.0)
    h2 = jnp.maximum(h1 @ p["w2"].T + p["b2"].T, 0.0)
    return jax.nn.sigmoid(h2 @ p["w3"].T + p["b3"].T)


if __name__ == "__main__":
    key = jax.random.PRNGKey(0)
    k_x, k_p = jax.random.split(key)
    params = init_params(k_p)

    # Small primary case (B=8, single padded tile) plus a case exercising a
    # multi-step grid with a partial final tile (B=640 -> tb=256 -> 3 steps).
    for B in (8, 640):
        x = jax.random.normal(jax.random.fold_in(k_x, B), (B, 16), dtype=jnp.float32)
        out = jax.block_until_ready(nn_model_ica_forward(x, params))
        ref = reference_forward(x, params)
        assert out.shape == (B, 1), out.shape
        max_err = float(jnp.max(jnp.abs(out - ref)))
        assert jnp.allclose(out, ref, atol=2e-3, rtol=0), f"mismatch: {max_err}"

    print("KERNEL_OK")
</pallas_src>

<mosaic_0001>
module attributes {stable_mosaic.version = 11 : i64} {
  func.func @mlp_kernel(%arg0: i32, %arg1: memref<128x16xf32, #tpu.memory_space<vmem>>, %arg2: memref<8x16xf32, #tpu.memory_space<vmem>>, %arg3: memref<8x1xf32, #tpu.memory_space<vmem>>, %arg4: memref<64x8xf32, #tpu.memory_space<vmem>>, %arg5: memref<64x1xf32, #tpu.memory_space<vmem>>, %arg6: memref<1x64xf32, #tpu.memory_space<vmem>>, %arg7: memref<1x1xf32, #tpu.memory_space<vmem>>, %arg8: memref<1x128xf32, #tpu.memory_space<vmem>>) attributes {dimension_semantics = [#tpu.dimension_semantics<parallel>], iteration_bounds = array<i64: 1>, scalar_prefetch = 0 : i64, scratch_operands = 0 : i64, tpu.core_type = #tpu.core_type<tc>, window_params = [{transform_indices = @transform_0, window_bounds = array<i64: 128, 16>}, {pipeline_mode = #tpu.pipeline_mode<synchronous>, transform_indices = @transform_1, window_bounds = array<i64: 8, 16>}, {pipeline_mode = #tpu.pipeline_mode<synchronous>, transform_indices = @transform_2, window_bounds = array<i64: 8, 1>}, {pipeline_mode = #tpu.pipeline_mode<synchronous>, transform_indices = @transform_3, window_bounds = array<i64: 64, 8>}, {pipeline_mode = #tpu.pipeline_mode<synchronous>, transform_indices = @transform_4, window_bounds = array<i64: 64, 1>}, {pipeline_mode = #tpu.pipeline_mode<synchronous>, transform_indices = @transform_5, window_bounds = array<i64: 1, 64>}, {pipeline_mode = #tpu.pipeline_mode<synchronous>, transform_indices = @transform_6, window_bounds = array<i64: 1, 1>}, {transform_indices = @transform_7, window_bounds = array<i64: 1, 128>}]} {
    %c0 = arith.constant 0 : index
    %c0_0 = arith.constant 0 : index
    %0 = vector.load %arg1[%c0, %c0_0] : memref<128x16xf32, #tpu.memory_space<vmem>>, vector<128x16xf32>
    %c0_1 = arith.constant 0 : index
    %c0_2 = arith.constant 0 : index
    %1 = vector.load %arg2[%c0_1, %c0_2] : memref<8x16xf32, #tpu.memory_space<vmem>>, vector<8x16xf32>
    %cst = arith.constant dense<0.000000e+00> : vector<8x128xf32>
    %2 = tpu.matmul %1, %0, %cst {dimension_numbers = #tpu.dot_dimension_numbers<[1], [1], [0], [0], [0, 0, 1, 0], [], []>} : vector<8x16xf32>, vector<128x16xf32>, vector<8x128xf32> -> vector<8x128xf32>
    %c0_3 = arith.constant 0 : index
    %c0_4 = arith.constant 0 : index
    %3 = vector.load %arg3[%c0_3, %c0_4] : memref<8x1xf32, #tpu.memory_space<vmem>>, vector<8x1xf32>
    %4 = vector.broadcast %3 : vector<8x1xf32> to vector<8x128xf32>
    %5 = arith.addf %2, %4 : vector<8x128xf32>
    %cst_5 = arith.constant 0.000000e+00 : f32
    %6 = vector.broadcast %cst_5 : f32 to vector<8x128xf32>
    %7 = arith.maximumf %5, %6 : vector<8x128xf32>
    %c0_6 = arith.constant 0 : index
    %c0_7 = arith.constant 0 : index
    %8 = vector.load %arg4[%c0_6, %c0_7] : memref<64x8xf32, #tpu.memory_space<vmem>>, vector<64x8xf32>
    %cst_8 = arith.constant dense<0.000000e+00> : vector<64x128xf32>
    %9 = tpu.matmul %8, %7, %cst_8 {dimension_numbers = #tpu.dot_dimension_numbers<[1], [0], [0], [1], [0, 0, 1, 1], [], []>} : vector<64x8xf32>, vector<8x128xf32>, vector<64x128xf32> -> vector<64x128xf32>
    %c0_9 = arith.constant 0 : index
    %c0_10 = arith.constant 0 : index
    %10 = vector.load %arg5[%c0_9, %c0_10] : memref<64x1xf32, #tpu.memory_space<vmem>>, vector<64x1xf32>
    %11 = vector.broadcast %10 : vector<64x1xf32> to vector<64x128xf32>
    %12 = arith.addf %9, %11 : vector<64x128xf32>
    %cst_11 = arith.constant 0.000000e+00 : f32
    %13 = vector.broadcast %cst_11 : f32 to vector<64x128xf32>
    %14 = arith.maximumf %12, %13 : vector<64x128xf32>
    %c0_12 = arith.constant 0 : index
    %c0_13 = arith.constant 0 : index
    %15 = vector.load %arg6[%c0_12, %c0_13] : memref<1x64xf32, #tpu.memory_space<vmem>>, vector<1x64xf32>
    %cst_14 = arith.constant dense<0.000000e+00> : vector<1x128xf32>
    %16 = tpu.matmul %15, %14, %cst_14 {dimension_numbers = #tpu.dot_dimension_numbers<[1], [0], [0], [1], [0, 0, 1, 1], [], []>} : vector<1x64xf32>, vector<64x128xf32>, vector<1x128xf32> -> vector<1x128xf32>
    %c0_15 = arith.constant 0 : index
    %c0_16 = arith.constant 0 : index
    %17 = vector.load %arg7[%c0_15, %c0_16] : memref<1x1xf32, #tpu.memory_space<vmem>>, vector<1x1xf32>
    %18 = vector.broadcast %17 : vector<1x1xf32> to vector<1x128xf32>
    %19 = arith.addf %16, %18 : vector<1x128xf32>
    %20 = math.absf %19 : vector<1x128xf32>
    %cst_17 = arith.constant 0.000000e+00 : f32
    %21 = vector.broadcast %cst_17 : f32 to vector<1x128xf32>
    %22 = arith.subf %21, %20 : vector<1x128xf32>
    %23 = math.exp %22 : vector<1x128xf32>
    %cst_18 = arith.constant 0.000000e+00 : f32
    %24 = vector.broadcast %cst_18 : f32 to vector<1x128xf32>
    %25 = arith.cmpf oge, %19, %24 : vector<1x128xf32>
    %cst_19 = arith.constant 1.000000e+00 : f32
    %26 = vector.broadcast %cst_19 : f32 to vector<1x128xf32>
    %27 = arith.addf %26, %23 : vector<1x128xf32>
    %cst_20 = arith.constant 1.000000e+00 : f32
    %28 = vector.broadcast %cst_20 : f32 to vector<1x128xf32>
    %29 = arith.divf %28, %27 : vector<1x128xf32>
    %cst_21 = arith.constant 1.000000e+00 : f32
    %30 = vector.broadcast %cst_21 : f32 to vector<1x128xf32>
    %31 = arith.addf %30, %23 : vector<1x128xf32>
    %32 = arith.divf %23, %31 : vector<1x128xf32>
    %33 = arith.select %25, %29, %32 : vector<1x128xi1>, vector<1x128xf32>
    %c0_22 = arith.constant 0 : index
    %c0_23 = arith.constant 0 : index
    %34 = vector.load %arg8[%c0_22, %c0_23] : memref<1x128xf32, #tpu.memory_space<vmem>>, vector<1x128xf32>
    tpu.vector_store %arg8[%c0_22, %c0_23], %33 {strides = array<i32>} : memref<1x128xf32, #tpu.memory_space<vmem>>, vector<1x128xf32>,
    return
  }
  func.func @transform_0(%arg0: i32) -> (i32, i32) {
    %c0_i32 = arith.constant 0 : i32
    %c0_i32_0 = arith.constant 0 : i32
    return %arg0, %c0_i32 : i32, i32
  }
  func.func @transform_1(%arg0: i32) -> (i32, i32) {
    %c0_i32 = arith.constant 0 : i32
    %c0_i32_0 = arith.constant 0 : i32
    %c0_i32_1 = arith.constant 0 : i32
    return %c0_i32, %c0_i32_0 : i32, i32
  }
  func.func @transform_2(%arg0: i32) -> (i32, i32) {
    %c0_i32 = arith.constant 0 : i32
    %c0_i32_0 = arith.constant 0 : i32
    %c0_i32_1 = arith.constant 0 : i32
    return %c0_i32, %c0_i32_0 : i32, i32
  }
  func.func @transform_3(%arg0: i32) -> (i32, i32) {
    %c0_i32 = arith.constant 0 : i32
    %c0_i32_0 = arith.constant 0 : i32
    %c0_i32_1 = arith.constant 0 : i32
    return %c0_i32, %c0_i32_0 : i32, i32
  }
  func.func @transform_4(%arg0: i32) -> (i32, i32) {
    %c0_i32 = arith.constant 0 : i32
    %c0_i32_0 = arith.constant 0 : i32
    %c0_i32_1 = arith.constant 0 : i32
    return %c0_i32, %c0_i32_0 : i32, i32
  }
  func.func @transform_5(%arg0: i32) -> (i32, i32) {
    %c0_i32 = arith.constant 0 : i32
    %c0_i32_0 = arith.constant 0 : i32
    %c0_i32_1 = arith.constant 0 : i32
    return %c0_i32, %c0_i32_0 : i32, i32
  }
  func.func @transform_6(%arg0: i32) -> (i32, i32) {
    %c0_i32 = arith.constant 0 : i32
    %c0_i32_0 = arith.constant 0 : i32
    %c0_i32_1 = arith.constant 0 : i32
    return %c0_i32, %c0_i32_0 : i32, i32
  }
  func.func @transform_7(%arg0: i32) -> (i32, i32) {
    %c0_i32 = arith.constant 0 : i32
    %c0_i32_0 = arith.constant 0 : i32
    return %c0_i32, %arg0 : i32, i32
  }
}

</mosaic_0001>

<bundles_post_ra>
// kernel: nn_model_ica_forward.1
= control target key start
LH: loop header
LB: loop body
LE: loop exit
PB: predicated region body
PF: predicated region fallthrough
CT: control target
= control target key end

     0   :  { %s899_s0 = inlined_call_operand.vmem [shape: f32[8,16], index: 0, kind: input, shape index: {}]   ;;  %s900_s1 = inlined_call_operand.vmem [shape: f32[8,16], index: 1, kind: input, shape index: {}]   ;;  %s901_s2 = inlined_call_operand.vmem [shape: f32[8,1], index: 2, kind: input, shape index: {}]   ;;  %s902_s3 = inlined_call_operand.vmem [shape: f32[64,8], index: 3, kind: input, shape index: {}]   ;;  %s903_s4 = inlined_call_operand.vmem [shape: f32[64,1], index: 4, kind: input, shape index: {}]   ;;  %s904_s5 = inlined_call_operand.vmem [shape: f32[1,64], index: 5, kind: input, shape index: {}]   ;;  %s905_s6 = inlined_call_operand.<no memory space> [shape: f32[1,1], index: 6, kind: input, shape index: {}]   ;;  %s906_s7 = inlined_call_operand.hbm [shape: f32[1,8], index: 7, kind: output, shape index: {}]  }
   0x1   :  { %v12_v0 = vstv %s905_s6 }
   0x2   :  { %13 = vst [vmem:[#allocation2] sm:$0x1] %v12_v0 }
   0x3   :  { %v29_v1 = vld [vmem:[%s899_s0] sm:$0xff]  ;;  %v30_v2 = vld [vmem:[%s899_s0 + $0x8] sm:$0xff]  ;;  %vm52_vm0 = vcmask 130048   ;;  %v687_v3 = vmov 0.0|0.0   ;;  %vm688_vm2 = vmmov 0   ;;  %v689_v6 = vmov 0.0  }
   0x4   :  { %608 = vmatprep.subr.bf16.mxu0 %v687_v3  ;;  %v609_v4 = vpack.c.bf16 %v30_v2, %v29_v1  ;;  %vm744_vm1 = vmpackc.low %vm52_vm0, %vm52_vm0  ;;  %572 = vmatprep.mubr.msk.f32.mxu0 %vm688_vm2, %v689_v6  ;;  %v690_v7 = vmov 0   ;;  %v31_v8 = vld [vmem:[%s899_s0 + $0x10] sm:$0xff]  ;;  %v32_v9 = vld [vmem:[%s899_s0 + $0x18] sm:$0xff] }
   0x5   :  { %657 = vset.pattern.permute.xlu0 %v690_v7  ;;  %658 = vset.pattern.permute.xlu1 %v690_v7  ;;  %v46_v10 = vld [vmem:[%s901_s2] sm:$0xff]  ;;  %v613_v11 = vpack.c.bf16 %v32_v9, %v31_v8 }
   0x6   :  { %611 = vmatpush3.bf16.xpose.msk.msra.mxu0 %vm744_vm1, %v609_v4  ;;  %49 = vperm.xlu0 %657, %v46_v10  }
   0x7   :  { %612 = vmatprep.subr.bf16.mxu0 %v687_v3 }
   0x8   :  { %14 = vsyncpa [#allocation4], 0  ;;  %v183_v12 = vld [vmem:[%s903_s4] sm:$0xff]  ;;  %v34_v14 = vld [vmem:[%s899_s0 + $0x28] sm:$0xff]  ;;  %vm231_vm3 = vcmask 64512   ;;  %vm380_vm4 = vcmask 523264  }
   0x9   :  { %v33_v13 = vld [vmem:[%s899_s0 + $0x20] sm:$0xff]  ;;  %v186_v15 = vld [vmem:[%s903_s4 + $0x18] sm:$0xff]  ;;  %v188_v17 = vld [vmem:[%s903_s4 + $0x28] sm:$0xff]  ;;  %s691_s2 = smov [#allocation3]  }
   0xa   :  { %193 = vperm.xlu0 %657, %v183_v12   ;;  %v617_v16 = vpack.c.bf16 %v34_v14, %v33_v13  ;;  %v35_v18 = vld [vmem:[%s899_s0 + $0x30] sm:$0xff]  ;;  %v36_v19 = vld [vmem:[%s899_s0 + $0x38] sm:$0xff]  ;;  %v37_v22 = vld [vmem:[%s899_s0 + $0x40] sm:$0xff]  ;;  %s471_s18 = sshll.u32 %s691_s2, 4  ;;  %s472_s18 = int_to_ptr.vmem [resolvable:$true] %s471_s18 }
   0xb   :  { %v190_v20 = vld [vmem:[%s903_s4 + $0x38] sm:$0xff]  ;;  %v621_v21 = vpack.c.bf16 %v36_v19, %v35_v18  ;;  %v38_v23 = vld [vmem:[%s899_s0 + $0x48] sm:$0xff]  ;;  %v39_v25 = vld [vmem:[%s899_s0 + $0x50] sm:$0xff]  ;;  %s667_s19 = scalar_lea.vmem %s472_s18, 32  ;;  %p668_p1 = scmp.lt.s32.totalorder %s472_s18, %s472_s18 }
   0xc   :  { %v625_v24 = vpack.c.bf16 %v38_v23, %v37_v22  ;;  %v40_v26 = vld [vmem:[%s899_s0 + $0x58] sm:$0xff]  ;;  %v41_v28 = vld [vmem:[%s899_s0 + $0x60] sm:$0xff]  ;;  %v42_v29 = vld [vmem:[%s899_s0 + $0x68] sm:$0xff] }
   0xd   :  { %v629_v27 = vpack.c.bf16 %v40_v26, %v39_v25  ;;  %v633_v30 = vpack.c.bf16 %v42_v29, %v41_v28  ;;  %v43_v31 = vld [vmem:[%s899_s0 + $0x70] sm:$0xff]  ;;  %v44_v32 = vld [vmem:[%s899_s0 + $0x78] sm:$0xff]  ;;  %v45_v34 = vld [vmem:[%s900_s1] sm:$0xff] }
   0xe   :  { %615 = vmatpush3.bf16.xpose.msk.msra.mxu0 %vm744_vm1, %v613_v11  ;;  %208 = vperm.xlu0 %657, %v186_v15   ;;  %v637_v33 = vpack.c.bf16 %v44_v32, %v43_v31  ;;  %v175_v35 = vld [vmem:[%s902_s3] sm:$0xff]  ;;  %v184_v36 = vld [vmem:[%s903_s4 + $0x8] sm:$0xff]  ;;  %v185_v37 = vld [vmem:[%s903_s4 + $0x10] sm:$0xff] }
   0xf   :  { %616 = vmatprep.subr.bf16.mxu0 %v687_v3  ;;  %577 = vmatprep.mubr.msk.f32.mxu1 %vm231_vm3, %v175_v35  ;;  %v187_v38 = vld [vmem:[%s903_s4 + $0x20] sm:$0xff]  ;;  %v189_v39 = vld [vmem:[%s903_s4 + $0x30] sm:$0xff]  ;;  %v176_v46 = vld [vmem:[%s902_s3 + $0x8] sm:$0xff] }
  0x10   :  { %198 = vperm.xlu1 %658, %v184_v36   ;;  %v370_v40 = vld [vmem:[#allocation2] sm:$0x1]  ;;  %v177_v47 = vld [vmem:[%s902_s3 + $0x10] sm:$0xff]  ;;  %v178_v48 = vld [vmem:[%s902_s3 + $0x18] sm:$0xff] }
  0x11   :  { %v179_v49 = vld [vmem:[%s902_s3 + $0x20] sm:$0xff]  ;;  %v180_v50 = vld [vmem:[%s902_s3 + $0x28] sm:$0xff]  ;;  %v181_v51 = vld [vmem:[%s902_s3 + $0x30] sm:$0xff] }
  0x12   :  { %218 = vperm.xlu0 %657, %v188_v17   ;;  %v182_v52 = vld [vmem:[%s902_s3 + $0x38] sm:$0xff]  ;;  %v369_v26 = vld [vmem:[%s904_s5] sm:$0x1]  ;;  %s663_s5 = scalar_lea.vmem %s472_s18, 16 }
  0x13   :  { %p664_p0 = scmp.ne.s32.totalorder %s472_s18, %s663_s5  ;;  %p669_p2 = scmp.lt.s32.totalorder %s667_s19, %s663_s5 }
  0x14   :  { %203 = vperm.xlu1 %658, %v185_v37  }
  0x15   :  { %p670_p3 = por %p669_p2, %p668_p1 }
  0x16   :  { %619 = vmatpush3.bf16.xpose.msk.msra.mxu0 %vm744_vm1, %v617_v16  ;;  %228 = vperm.xlu0 %657, %v190_v20  }
  0x17   :  { %620 = vmatprep.subr.bf16.mxu0 %v687_v3  ;;  %p671_p4 = pnand %p670_p3, %p664_p0 }
  0x18   :  { %213 = vperm.xlu1 %658, %v187_v38  }
  0x1c   :  { %223 = vperm.xlu1 %658, %v189_v39  }
  0x1e   :  { %623 = vmatpush3.bf16.xpose.msk.msra.mxu0 %vm744_vm1, %v621_v21 }
  0x1f   :  { %624 = vmatprep.subr.bf16.mxu0 %v687_v3 }
  0x20   :  { %373 = vperm.xlu1 %658, %v370_v40  }
  0x26   :  { %627 = vmatpush3.bf16.xpose.msk.msra.mxu0 %vm744_vm1, %v625_v24 }
  0x27   :  { %628 = vmatprep.subr.bf16.mxu0 %v687_v3 }
  0x2e   :  { %631 = vmatpush3.bf16.xpose.msk.msra.mxu0 %vm744_vm1, %v629_v27  ;;  %v376_v27 = vlaneseq }
  0x2f   :  { %632 = vmatprep.subr.bf16.mxu0 %v687_v3 }
  0x30   :  { %v377_v28 = vshrl.u32 %v376_v27, 7 }
  0x32   :  { %v378_v29 = vsub.s32 0, %v377_v28 }
  0x36   :  { %635 = vmatpush3.bf16.xpose.msk.msra.mxu0 %vm744_vm1, %v633_v30 }
  0x37   :  { %636 = vmatprep.subr.bf16.mxu0 %v687_v3 }
  0x3e   :  { %639 = vmatpush3.bf16.xpose.msk.msra.mxu0 %vm744_vm1, %v637_v33 }
  0x45   :  { %573 = vmatmul.mubr.msk.f32.vlgmr.msra.gmra.mrb[0].mxu0 %vm52_vm0, %v45_v34 }
  0x85   :  { %v50_v41 = vpop.permute.xlu0 %49 }
  0x89   :  { %v194_v53 = vpop.permute.xlu0 %193 }
  0x8d   :  { %v209_v55 = vpop.permute.xlu0 %208 }
  0x8f   :  { %v199_v54 = vpop.permute.xlu1 %198 }
  0x91   :  { %v219_v2 = vpop.permute.xlu0 %218 }
  0x93   :  { %v204_v57 = vpop.permute.xlu1 %203 }
  0x95   :  { %v229_v15 = vpop.permute.xlu0 %228 }
  0x97   :  { %v214_v7 = vpop.permute.xlu1 %213 }
  0x9b   :  { %v224_v18 = vpop.permute.xlu1 %223 }
  0x9f   :  { %v374_v30 = vpop.permute.xlu1 %373 }
  0xa0   :  { %v379_v31 = vrot.slane %v374_v30, %v378_v29 }
 0x118   :  { %v170_v42 = vpop.f32.mrb[0].mxu0 }
 0x119   :  { %v171_v43 = vadd.f32 %v170_v42, %v50_v41  ;;  %v574_v44 = vpop.f32.mrb[1].mxu0 }
 0x11b   :  { %v174_v45 = vmax.f32 %v171_v43, 0.0 }
 0x11d   :  { %575 = vmatprep.subr.mxu1 %v174_v45 }
 0x11e   :  { %576 = vmatpush3.msra.mxu1 %v174_v45 }
 0x11f   :  { %578 = vmatmul.mubr.msk.f32.vlgmr.msra.gmra.mrb[0].mxu1 %vm231_vm3, %v176_v46  ;;  %640 = vmatprep.subr.bf16.mxu1 %v687_v3 }
 0x120   :  { %580 = vmatprep.mubr.msk.f32.mxu1 %vm231_vm3, %v177_v47 }
 0x123   :  { %581 = vmatmul.mubr.msk.f32.gmra.mrb[2].mxu1 %vm231_vm3, %v178_v48 }
 0x124   :  { %583 = vmatprep.mubr.msk.f32.mxu1 %vm231_vm3, %v179_v49 }
 0x127   :  { %584 = vmatmul.mubr.msk.f32.gmra.mrb[4].mxu1 %vm231_vm3, %v180_v50 }
 0x128   :  { %586 = vmatprep.mubr.msk.f32.mxu1 %vm231_vm3, %v181_v51 }
 0x12b   :  { %587 = vmatmul.mubr.msk.f32.gmra.mrb[6].mxu1 %vm231_vm3, %v182_v52 }
 0x12c   :  { %605 = vmatprep.mubr.msk.f32.mxu1 %vm688_vm2, %v689_v6 }
 0x1f2   :  { %v579_v56 = vpop.f32.mrb[0].mxu1 }
 0x1f3   :  { %v328_v58 = vadd.f32 %v579_v56, %v199_v54  ;;  %v322_v59 = vpop.f32.mrb[1].mxu1 }
 0x1f4   :  { %v323_v60 = vadd.f32 %v322_v59, %v194_v53 }
 0x1f5   :  { %v362_v61 = vmax.f32 %v328_v58, 0.0 }
 0x1f6   :  { %v361_v62 = vmax.f32 %v323_v60, 0.0  ;;  %v582_v63 = vpop.f32.mrb[2].mxu1 }
 0x1f7   :  { %v338_v0 = vadd.f32 %v582_v63, %v209_v55  ;;  %v332_v1 = vpop.f32.mrb[3].mxu1 }
 0x1f8   :  { %v641_v4 = vpack.c.bf16 %v362_v61, %v361_v62  ;;  %v333_v5 = vadd.f32 %v332_v1, %v204_v57 }
 0x1f9   :  { %v364_v8 = vmax.f32 %v338_v0, 0.0 }
 0x1fa   :  { %v363_v9 = vmax.f32 %v333_v5, 0.0  ;;  %v585_v6 = vpop.f32.mrb[4].mxu1  ;;  %642 = vmatpush3.bf16.msra.mxu1 %v641_v4 }
 0x1fb   :  { %v348_v10 = vadd.f32 %v585_v6, %v219_v2  ;;  %v342_v11 = vpop.f32.mrb[5].mxu1  ;;  %643 = vmatprep.subr.bf16.mxu1 %v687_v3 }
 0x1fc   :  { %v644_v12 = vpack.c.bf16 %v364_v8, %v363_v9  ;;  %v343_v13 = vadd.f32 %v342_v11, %v214_v7 }
 0x1fd   :  { %v366_v14 = vmax.f32 %v348_v10, 0.0 }
 0x1fe   :  { %v365_v16 = vmax.f32 %v343_v13, 0.0  ;;  %v588_v17 = vpop.f32.mrb[6].mxu1  ;;  %645 = vmatpush3.bf16.msra.mxu1 %v644_v12 }
 0x1ff   :  { %v358_v19 = vadd.f32 %v588_v17, %v229_v15  ;;  %v352_v20 = vpop.f32.mrb[7].mxu1  ;;  %646 = vmatprep.subr.bf16.mxu1 %v687_v3 }
 0x200   :  { %v647_v21 = vpack.c.bf16 %v366_v14, %v365_v16  ;;  %v353_v22 = vadd.f32 %v352_v20, %v224_v18 }
 0x201   :  { %v368_v23 = vmax.f32 %v358_v19, 0.0 }
 0x202   :  { %v367_v24 = vmax.f32 %v353_v22, 0.0  ;;  %648 = vmatpush3.bf16.msra.mxu1 %v647_v21 }
 0x203   :  { %649 = vmatprep.subr.bf16.mxu1 %v687_v3 }
 0x204   :  { %v650_v25 = vpack.c.bf16 %v368_v23, %v367_v24 }
 0x206   :  { %651 = vmatpush3.bf16.msra.mxu1 %v650_v25 }
 0x209   :  { %606 = vmatmul.mubr.msk.f32.vlgmr.msra.gmra.mrb[8].mxu1 %vm380_vm4, %v369_v26 }
 0x2dc   :  { %v450_v32 = vpop.f32.mrb[8].mxu1 }
 0x2dd   :  { %v451_v33 = vadd.f32 %v450_v32, %v379_v31  ;;  %v607_v34 = vpop.f32.mrb[9].mxu1 }
 0x2df   :  { %v454_v35 = vand.u32 2147483647, %v451_v33  ;;  %vm458_vm5 = vcmp.ge.f32.partialorder %v451_v33, 0.0 }
 0x2e1   :  { %v455_v36 = vsub.f32 0.0, %v454_v35 }
 0x2e3   :  { %v456_v37 = vmul.f32 1.442695, %v455_v36 }
 0x2e5   :  { %659 = vpow2.f32 %v456_v37 }
 0x2ef   :  { %v660_v3 = vpop.eup %659 }
 0x2f0   :  { %v459_v38 = vadd.f32 1.0, %v660_v3 }
 0x2f2   :  { %661 = vrcp.f32 %v459_v38 }
 0x2fc   :  { %v662_v39 = vpop.eup %661 }
 0x2fd   :  { %v462_v40 = vmul.f32 %v662_v39, %v660_v3 }
 0x2ff   :  { %v463_v41 = vsel %vm458_vm5, %v662_v39, %v462_v40 }
 0x300   :  { %464 = vst [vmem:[#allocation3] sm:$0x1] %v463_v41 }
 0x301   :  { %674 = shalt.err (!%p671_p4)
}
 0x302   :  { %s675_s22 = scalar_lea.hbm %s906_s7, 16 }
 0x303   :  { %p676_p5 = scmp.ne.s32.totalorder %s906_s7, %s675_s22  ;;  %p679_p6 = scmp.lt.u32.totalorder %s675_s22, %s906_s7 }
 0x305   :  { %p681_p7 = pnand %p679_p6, %p676_p5 }
 0x307   :  { %684 = shalt.err (!%p681_p7)
}
 0x308   :  { %474 = dma.vmem_to_hbm [thread:$0]  %s472_s18, 16, %s906_s7, [#allocation4]  }
 0x309   :  { %685 = dma.done.wait [#allocation4], 16  }
 0x30a   :  { %686 = vsyncadd [#allocation4], 4294967280 }
 0x30b   :  { %478 = vsyncpa [#allocation4], 1 }

</bundles_post_ra>
